<compile_context>
chip_gen: v7x
topology: tpu7x:2x2x1
jax: 0.10.0
libtpu: 0.0.40
codegen_flags: <defaults>
</compile_context>

<pallas_src>
import jax
import jax.numpy as jnp
from jax.experimental import pallas as pl
from jax.experimental.pallas import tpu as pltpu


def _critic_kernel(x_ref, w1t_ref, b1_ref, w2t_ref, b2_ref, w3t_ref, b3_ref, out_ref):
    # x_ref: (TILE_B, obs_dim) f32 block of the observation batch.
    # One small XLU transpose -> batch lives in the 128-lane axis from here on.
    xt = x_ref[...].T.astype(jnp.bfloat16)                        # (obs_dim, TILE_B)

    # Layer 1: W1^T @ x_t + b1, tanh   (bf16 MXU inputs, f32 accumulation).
    h = jnp.dot(w1t_ref[...], xt, preferred_element_type=jnp.float32)
    h = jnp.tanh(h + b1_ref[...]).astype(jnp.bfloat16)            # (h1, TILE_B)

    # Layer 2: W2^T @ h + b2, tanh.
    h = jnp.dot(w2t_ref[...], h, preferred_element_type=jnp.float32)
    h = jnp.tanh(h + b2_ref[...]).astype(jnp.bfloat16)            # (h2, TILE_B)

    # Output layer (out_features == 1): (1, h2) @ (h2, TILE_B) -> lane-dense row,
    # stored with full-lane (unmasked) vst.
    v = jnp.dot(w3t_ref[...], h, preferred_element_type=jnp.float32)
    out_ref[...] = (v + b3_ref[0, 0]).astype(out_ref.dtype)       # (1, TILE_B)


def _round_up(x, m):
    return ((x + m - 1) // m) * m


def _choose_tiling(batch, max_tile_b):
    """tile_b (multiple of 128) and num_tiles; prefer >=2 (even) tiles so the
    'parallel' batch axis splits across v7x's two TensorCores."""
    max_tile_b = max(128, (max_tile_b // 128) * 128)
    b128 = _round_up(batch, 128)
    n = max(1, pl.cdiv(b128, max_tile_b))
    if b128 > 128:
        n = max(n, 2)
    if n > 1 and n % 2 == 1:
        n += 1
    tile_b = max(128, _round_up(pl.cdiv(b128, n), 128))
    num_tiles = pl.cdiv(b128, tile_b)
    return tile_b, num_tiles


def critic_forward(observation, params, *, max_tile_b=8192):
    """observation: [B, obs_dim] float32 -> value: [B] float32 (squeeze(-1))."""
    w1, b1, w2, b2, w3, b3 = params
    B, obs_dim = observation.shape
    h1 = w1.shape[1]
    h2 = w2.shape[1]

    tile_b, num_tiles = _choose_tiling(B, max_tile_b)
    padded_b = num_tiles * tile_b

    # Pad only tiny batches (< one 128-row tile).  For larger batches the
    # ragged last block reads past the end of the array; those rows never mix
    # with valid lanes (contractions are over features only) and are discarded
    # by the final [:B] slice -- no full-array HBM pad copy.
    if B < tile_b:
        observation = jnp.pad(observation, ((0, tile_b - B), (0, 0)))

    # Kernel-layout parameters: transposed bf16 weights, column f32 biases.
    w1t = w1.T.astype(jnp.bfloat16)        # (h1, obs_dim)
    w2t = w2.T.astype(jnp.bfloat16)        # (h2, h1)
    w3t = w3.T.astype(jnp.bfloat16)        # (1, h2)
    b1c = b1.reshape(h1, 1)
    b2c = b2.reshape(h2, 1)
    b3s = b3.reshape(1, 1)                 # scalar -> SMEM

    cost = pl.CostEstimate(
        flops=2 * padded_b * (obs_dim * h1 + h1 * h2 + h2),
        transcendentals=padded_b * (h1 + h2),
        bytes_accessed=(padded_b * obs_dim + padded_b) * 4
                       + (obs_dim * h1 + h1 * h2 + h2) * 2
                       + (h1 + h2 + 1) * 4,
    )

    out = pl.pallas_call(
        _critic_kernel,
        out_shape=jax.ShapeDtypeStruct((num_tiles, tile_b), jnp.float32),
        grid=(num_tiles,),
        in_specs=[
            pl.BlockSpec((tile_b, obs_dim), lambda i: (i, 0)),   # observation (pipelined)
            pl.BlockSpec((h1, obs_dim), lambda i: (0, 0)),       # W1^T (resident)
            pl.BlockSpec((h1, 1), lambda i: (0, 0)),             # b1 column (resident)
            pl.BlockSpec((h2, h1), lambda i: (0, 0)),            # W2^T (resident)
            pl.BlockSpec((h2, 1), lambda i: (0, 0)),             # b2 column (resident)
            pl.BlockSpec((1, h2), lambda i: (0, 0)),             # w3^T row (resident)
            pl.BlockSpec(memory_space=pltpu.MemorySpace.SMEM),   # b3 scalar
        ],
        out_specs=pl.BlockSpec((1, tile_b), lambda i: (i, 0)),   # lane-dense rows
        compiler_params=pltpu.CompilerParams(
            dimension_semantics=("parallel",)),
        cost_estimate=cost,
    )(observation, w1t, b1c, w2t, b2c, w3t, b3s)

    # Rows of (num_tiles, TILE_B) are the batch in order; flatten and drop any
    # padding/ragged tail; the module's squeeze(-1) is implicit in the 1-D result.
    return out.reshape(num_tiles * tile_b)[:B]


def init_critic_params(key, observation_dim, hidden_sizes):
    """Deterministic synthetic init of the MLP parameters (nn.Linear shapes)."""
    sizes = [observation_dim] + list(hidden_sizes) + [1]
    params = []
    for j in range(len(sizes) - 1):
        key, kw, kb = jax.random.split(key, 3)
        fan_in = sizes[j]
        bound = 1.0 / jnp.sqrt(fan_in)
        # weight stored as [in, out] so x @ W matches PyTorch's x @ W_torch^T
        w = jax.random.uniform(kw, (sizes[j], sizes[j + 1]), jnp.float32, -bound, bound)
        b = jax.random.uniform(kb, (1, sizes[j + 1]), jnp.float32, -bound, bound)
        params += [w, b]
    return tuple(params)


def _reference(observation, params):
    w1, b1, w2, b2, w3, b3 = params
    r = jnp.tanh(observation @ w1 + b1)
    r = jnp.tanh(r @ w2 + b2)
    return jnp.squeeze(r @ w3 + b3, -1)


if __name__ == "__main__":
    # Shapes consistent with Critic(observation_dim=16, hidden_sizes=(32, 32), activation=Tanh)
    OBS_DIM = 16
    HIDDEN_SIZES = (32, 32)
    # bf16 MXU operands (f32 accumulation) -> small deviation from the f32 reference.
    ATOL = 3e-2

    key = jax.random.PRNGKey(0)
    key, kx1, kx2 = jax.random.split(key, 3)
    params = init_critic_params(key, OBS_DIM, HIDDEN_SIZES)

    # Case 1: tiny batch (padded up to a single 128-row tile).
    obs_small = jax.random.normal(kx1, (8, OBS_DIM), jnp.float32)
    val_small = jax.block_until_ready(critic_forward(obs_small, params))
    assert val_small.shape == (8,)
    assert jnp.allclose(val_small, _reference(obs_small, params), atol=ATOL), \
        "mismatch vs reference (small batch)"

    obs_big = jax.random.normal(kx2, (300, OBS_DIM), jnp.float32)
    ref_big = _reference(obs_big, params)

    # Case 2: forced small tile -> 3 grid steps, ragged last block (rows 256..299 valid).
    val_big = jax.block_until_ready(critic_forward(obs_big, params, max_tile_b=128))
    assert val_big.shape == (300,)
    assert jnp.allclose(val_big, ref_big, atol=ATOL), \
        "mismatch vs reference (multi-tile batch, tile=128)"

    # Case 3: default tiling -> 2 tiles of 256 (even count for v7x), ragged last block.
    val_def = jax.block_until_ready(critic_forward(obs_big, params))
    assert val_def.shape == (300,)
    assert jnp.allclose(val_def, ref_big, atol=ATOL), \
        "mismatch vs reference (default tiling)"

    print("KERNEL_OK")
</pallas_src>

<mosaic_0001>
module attributes {stable_mosaic.version = 11 : i64} {
  func.func @_critic_kernel(%arg0: i32, %arg1: memref<128x16xf32, #tpu.memory_space<vmem>>, %arg2: memref<32x16xbf16, #tpu.memory_space<vmem>>, %arg3: memref<32x1xf32, #tpu.memory_space<vmem>>, %arg4: memref<32x32xbf16, #tpu.memory_space<vmem>>, %arg5: memref<32x1xf32, #tpu.memory_space<vmem>>, %arg6: memref<1x32xbf16, #tpu.memory_space<vmem>>, %arg7: memref<1x1xf32, #tpu.memory_space<smem>>, %arg8: memref<1x128xf32, #tpu.memory_space<vmem>>) attributes {dimension_semantics = [#tpu.dimension_semantics<parallel>], iteration_bounds = array<i64: 1>, scalar_prefetch = 0 : i64, scratch_operands = 0 : i64, tpu.core_type = #tpu.core_type<tc>, window_params = [{transform_indices = @transform_0, window_bounds = array<i64: 128, 16>}, {pipeline_mode = #tpu.pipeline_mode<synchronous>, transform_indices = @transform_1, window_bounds = array<i64: 32, 16>}, {pipeline_mode = #tpu.pipeline_mode<synchronous>, transform_indices = @transform_2, window_bounds = array<i64: 32, 1>}, {pipeline_mode = #tpu.pipeline_mode<synchronous>, transform_indices = @transform_3, window_bounds = array<i64: 32, 32>}, {pipeline_mode = #tpu.pipeline_mode<synchronous>, transform_indices = @transform_4, window_bounds = array<i64: 32, 1>}, {pipeline_mode = #tpu.pipeline_mode<synchronous>, transform_indices = @transform_5, window_bounds = array<i64: 1, 32>}, {transform_indices = @transform_6, window_bounds = array<i64: 1, 1>}, {transform_indices = @transform_7, window_bounds = array<i64: 1, 128>}]} {
    %c0 = arith.constant 0 : index
    %c0_0 = arith.constant 0 : index
    %0 = vector.load %arg1[%c0, %c0_0] : memref<128x16xf32, #tpu.memory_space<vmem>>, vector<128x16xf32>
    %1 = tpu.transpose %0, [1, 0] : vector<128x16xf32> -> vector<16x128xf32>
    %2 = arith.truncf %1 : vector<16x128xf32> to vector<16x128xbf16>
    %c0_1 = arith.constant 0 : index
    %c0_2 = arith.constant 0 : index
    %3 = vector.load %arg2[%c0_1, %c0_2] : memref<32x16xbf16, #tpu.memory_space<vmem>>, vector<32x16xbf16>
    %cst = arith.constant dense<0.000000e+00> : vector<32x128xf32>
    %4 = tpu.matmul %3, %2, %cst {dimension_numbers = #tpu.dot_dimension_numbers<[1], [0], [0], [1], [0, 0, 1, 1], [], []>} : vector<32x16xbf16>, vector<16x128xbf16>, vector<32x128xf32> -> vector<32x128xf32>
    %c0_3 = arith.constant 0 : index
    %c0_4 = arith.constant 0 : index
    %5 = vector.load %arg3[%c0_3, %c0_4] : memref<32x1xf32, #tpu.memory_space<vmem>>, vector<32x1xf32>
    %6 = vector.broadcast %5 : vector<32x1xf32> to vector<32x128xf32>
    %7 = arith.addf %4, %6 : vector<32x128xf32>
    %8 = math.tanh %7 : vector<32x128xf32>
    %9 = arith.truncf %8 : vector<32x128xf32> to vector<32x128xbf16>
    %c0_5 = arith.constant 0 : index
    %c0_6 = arith.constant 0 : index
    %10 = vector.load %arg4[%c0_5, %c0_6] : memref<32x32xbf16, #tpu.memory_space<vmem>>, vector<32x32xbf16>
    %cst_7 = arith.constant dense<0.000000e+00> : vector<32x128xf32>
    %11 = tpu.matmul %10, %9, %cst_7 {dimension_numbers = #tpu.dot_dimension_numbers<[1], [0], [0], [1], [0, 0, 1, 1], [], []>} : vector<32x32xbf16>, vector<32x128xbf16>, vector<32x128xf32> -> vector<32x128xf32>
    %c0_8 = arith.constant 0 : index
    %c0_9 = arith.constant 0 : index
    %12 = vector.load %arg5[%c0_8, %c0_9] : memref<32x1xf32, #tpu.memory_space<vmem>>, vector<32x1xf32>
    %13 = vector.broadcast %12 : vector<32x1xf32> to vector<32x128xf32>
    %14 = arith.addf %11, %13 : vector<32x128xf32>
    %15 = math.tanh %14 : vector<32x128xf32>
    %16 = arith.truncf %15 : vector<32x128xf32> to vector<32x128xbf16>
    %c0_10 = arith.constant 0 : index
    %c0_11 = arith.constant 0 : index
    %17 = vector.load %arg6[%c0_10, %c0_11] : memref<1x32xbf16, #tpu.memory_space<vmem>>, vector<1x32xbf16>
    %cst_12 = arith.constant dense<0.000000e+00> : vector<1x128xf32>
    %18 = tpu.matmul %17, %16, %cst_12 {dimension_numbers = #tpu.dot_dimension_numbers<[1], [0], [0], [1], [0, 0, 1, 1], [], []>} : vector<1x32xbf16>, vector<32x128xbf16>, vector<1x128xf32> -> vector<1x128xf32>
    %c0_13 = arith.constant 0 : index
    %c0_14 = arith.constant 0 : index
    %19 = memref.load %arg7[%c0_13, %c0_14] : memref<1x1xf32, #tpu.memory_space<smem>>
    %20 = vector.broadcast %19 : f32 to vector<1x128xf32>
    %21 = arith.addf %18, %20 : vector<1x128xf32>
    %c0_15 = arith.constant 0 : index
    %c0_16 = arith.constant 0 : index
    %22 = vector.load %arg8[%c0_15, %c0_16] : memref<1x128xf32, #tpu.memory_space<vmem>>, vector<1x128xf32>
    tpu.vector_store %arg8[%c0_15, %c0_16], %21 {strides = array<i32>} : memref<1x128xf32, #tpu.memory_space<vmem>>, vector<1x128xf32>,
    return
  }
  func.func @transform_0(%arg0: i32) -> (i32, i32) {
    %c0_i32 = arith.constant 0 : i32
    %c0_i32_0 = arith.constant 0 : i32
    return %arg0, %c0_i32 : i32, i32
  }
  func.func @transform_1(%arg0: i32) -> (i32, i32) {
    %c0_i32 = arith.constant 0 : i32
    %c0_i32_0 = arith.constant 0 : i32
    %c0_i32_1 = arith.constant 0 : i32
    return %c0_i32, %c0_i32_0 : i32, i32
  }
  func.func @transform_2(%arg0: i32) -> (i32, i32) {
    %c0_i32 = arith.constant 0 : i32
    %c0_i32_0 = arith.constant 0 : i32
    %c0_i32_1 = arith.constant 0 : i32
    return %c0_i32, %c0_i32_0 : i32, i32
  }
  func.func @transform_3(%arg0: i32) -> (i32, i32) {
    %c0_i32 = arith.constant 0 : i32
    %c0_i32_0 = arith.constant 0 : i32
    %c0_i32_1 = arith.constant 0 : i32
    return %c0_i32, %c0_i32_0 : i32, i32
  }
  func.func @transform_4(%arg0: i32) -> (i32, i32) {
    %c0_i32 = arith.constant 0 : i32
    %c0_i32_0 = arith.constant 0 : i32
    %c0_i32_1 = arith.constant 0 : i32
    return %c0_i32, %c0_i32_0 : i32, i32
  }
  func.func @transform_5(%arg0: i32) -> (i32, i32) {
    %c0_i32 = arith.constant 0 : i32
    %c0_i32_0 = arith.constant 0 : i32
    %c0_i32_1 = arith.constant 0 : i32
    return %c0_i32, %c0_i32_0 : i32, i32
  }
  func.func @transform_6(%arg0: i32) -> (i32, i32) {
    %c0_i32 = arith.constant 0 : i32
    %c0_i32_0 = arith.constant 0 : i32
    %c0_i32_1 = arith.constant 0 : i32
    return %c0_i32, %c0_i32_0 : i32, i32
  }
  func.func @transform_7(%arg0: i32) -> (i32, i32) {
    %c0_i32 = arith.constant 0 : i32
    %c0_i32_0 = arith.constant 0 : i32
    return %arg0, %c0_i32 : i32, i32
  }
}

</mosaic_0001>

<bundles_post_ra>
// kernel: tpu_custom_call.1
= control target key start
LH: loop header
LB: loop body
LE: loop exit
PB: predicated region body
PF: predicated region fallthrough
CT: control target
= control target key end

     0   :  { %s581_s0 = inlined_call_operand.vmem [shape: f32[128,16], index: 0, kind: input, shape index: {}]   ;;  %s582_s1 = inlined_call_operand.vmem [shape: bf16[32,16], index: 1, kind: input, shape index: {}]   ;;  %s583_s2 = inlined_call_operand.vmem [shape: f32[32,1], index: 2, kind: input, shape index: {}]   ;;  %s584_s3 = inlined_call_operand.vmem [shape: bf16[32,32], index: 3, kind: input, shape index: {}]   ;;  %s585_s4 = inlined_call_operand.vmem [shape: f32[32,1], index: 4, kind: input, shape index: {}]   ;;  %s586_s5 = inlined_call_operand.vmem [shape: bf16[1,32], index: 5, kind: input, shape index: {}]   ;;  %s587_s6 = inlined_call_operand.<no memory space> [shape: f32[1,1], index: 6, kind: input, shape index: {}]   ;;  %s588_s7 = inlined_call_operand.hbm [shape: f32[1,128], index: 7, kind: output, shape index: {}]  }
   0x1   :  { %v29_v0 = vld [vmem:[%s581_s0] sm:$0xff]  ;;  %v30_v1 = vld [vmem:[%s581_s0 + $0x8] sm:$0xff]  ;;  %v31_v2 = vld [vmem:[%s581_s0 + $0x10] sm:$0xff] }
   0x2   :  { %45 = vxpose.xlu0.b32.start [1/16] (narrow) %v29_v0, 16 }
   0x6   :  { %46 = vxpose.xlu0.b32.cont [2/16] (narrow) %v30_v1, 16 }
   0x7   :  { %13 = vsyncpa [#allocation4], 0  ;;  %v386_v3 = vld [vmem:[%s582_s1] sm:$0xff]   ;;  %vm116_vm0 = vcmask 130048   ;;  %v32_v4 = vld [vmem:[%s581_s0 + $0x18] sm:$0xff]  ;;  %v430_v6 = vmov 0  }
   0x8   :  { %360 = vmatprep.mubr.msk.bf16.mxu0 %vm116_vm0, %v386_v3  ;;  %v82_v5 = vld [vmem:[%s583_s2] sm:$0xff]  ;;  %384 = vset.pattern.permute.xlu1 %v430_v6  ;;  %v83_v8 = vld [vmem:[%s583_s2 + $0x8] sm:$0xff]  ;;  %v84_v10 = vld [vmem:[%s583_s2 + $0x10] sm:$0xff]  ;;  %vm216_vm1 = vcmask 261120   ;;  %v431_v50 = vmov 0.0   ;;  %vm432_vm2 = vmmov 0  }
   0x9   :  { %v33_v7 = vld [vmem:[%s581_s0 + $0x20] sm:$0xff]  ;;  %88 = vperm.xlu1 %384, %v82_v5   ;;  %v34_v9 = vld [vmem:[%s581_s0 + $0x28] sm:$0xff]  ;;  %v35_v11 = vld [vmem:[%s581_s0 + $0x30] sm:$0xff] }
   0xa   :  { %47 = vxpose.xlu0.b32.cont [3/16] (narrow) %v31_v2, 16  ;;  %v85_v12 = vld [vmem:[%s583_s2 + $0x18] sm:$0xff]  ;;  %v182_v14 = vld [vmem:[%s585_s4] sm:$0xff]  ;;  %v183_v16 = vld [vmem:[%s585_s4 + $0x8] sm:$0xff]  ;;  %s433_s2 = smov [#allocation3]  }
   0xb   :  { %v36_v13 = vld [vmem:[%s581_s0 + $0x38] sm:$0xff]  ;;  %v37_v15 = vld [vmem:[%s581_s0 + $0x40] sm:$0xff]  ;;  %v38_v17 = vld [vmem:[%s581_s0 + $0x48] sm:$0xff]  ;;  %s331_s10 = sshll.u32 %s433_s2, 4  ;;  %s332_s10 = int_to_ptr.vmem [resolvable:$true] %s331_s10 }
   0xc   :  { %v184_v18 = vld [vmem:[%s585_s4 + $0x10] sm:$0xff]  ;;  %v185_v20 = vld [vmem:[%s585_s4 + $0x18] sm:$0xff]  ;;  %v41_v22 = vld [vmem:[%s581_s0 + $0x60] sm:$0xff]  ;;  %s406_s11 = scalar_lea.vmem %s332_s10, 16  ;;  %s410_s12 = scalar_lea.vmem %s332_s10, 32 }
   0xd   :  { %93 = vperm.xlu1 %384, %v83_v8   ;;  %v39_v19 = vld [vmem:[%s581_s0 + $0x50] sm:$0xff]  ;;  %v40_v21 = vld [vmem:[%s581_s0 + $0x58] sm:$0xff]  ;;  %v42_v23 = vld [vmem:[%s581_s0 + $0x68] sm:$0xff]  ;;  %p407_p0 = scmp.ne.s32.totalorder %s332_s10, %s406_s11  ;;  %p411_p1 = scmp.lt.s32.totalorder %s332_s10, %s332_s10 }
   0xe   :  { %48 = vxpose.xlu0.b32.cont [4/16] (narrow) %v32_v4, 16  ;;  %v43_v24 = vld [vmem:[%s581_s0 + $0x70] sm:$0xff]  ;;  %v44_v25 = vld [vmem:[%s581_s0 + $0x78] sm:$0xff]  ;;  %v387_v29 = vld [vmem:[%s582_s1 + $0x8] sm:$0xff]   ;;  %p412_p2 = scmp.lt.s32.totalorder %s410_s12, %s406_s11 }
   0xf   :  { %v388_v30 = vld [vmem:[%s584_s3] sm:$0xff]   ;;  %v389_v49 = vld [vmem:[%s584_s3 + $0x8] sm:$0xff]  }
  0x10   :  { %368 = vmatprep.mubr.msk.bf16.mxu1 %vm216_vm1, %v388_v30  ;;  %v278_v5 = vld [vmem:[%s586_s5] sm:$0x1]  ;;  %p413_p3 = por %p412_p2, %p411_p1 }
  0x11   :  { %98 = vperm.xlu1 %384, %v84_v10  }
  0x12   :  { %49 = vxpose.xlu0.b32.cont [5/16] (narrow) %v33_v7, 16  ;;  %p414_p4 = pnand %p413_p3, %p407_p0 }
  0x15   :  { %103 = vperm.xlu1 %384, %v85_v12  }
  0x16   :  { %50 = vxpose.xlu0.b32.cont [6/16] (narrow) %v34_v9, 16 }
  0x19   :  { %188 = vperm.xlu1 %384, %v182_v14  }
  0x1a   :  { %51 = vxpose.xlu0.b32.cont [7/16] (narrow) %v35_v11, 16 }
  0x1d   :  { %193 = vperm.xlu1 %384, %v183_v16  }
  0x1e   :  { %52 = vxpose.xlu0.b32.cont [8/16] (narrow) %v36_v13, 16 }
  0x21   :  { %198 = vperm.xlu1 %384, %v184_v18  }
  0x22   :  { %53 = vxpose.xlu0.b32.cont [9/16] (narrow) %v37_v15, 16 }
  0x25   :  { %203 = vperm.xlu1 %384, %v185_v20  }
  0x26   :  { %54 = vxpose.xlu0.b32.cont [10/16] (narrow) %v38_v17, 16 }
  0x2a   :  { %55 = vxpose.xlu0.b32.cont [11/16] (narrow) %v39_v19, 16 }
  0x2e   :  { %56 = vxpose.xlu0.b32.cont [12/16] (narrow) %v40_v21, 16 }
  0x32   :  { %57 = vxpose.xlu0.b32.cont [13/16] (narrow) %v41_v22, 16 }
  0x36   :  { %58 = vxpose.xlu0.b32.cont [14/16] (narrow) %v42_v23, 16 }
  0x3a   :  { %59 = vxpose.xlu0.b32.cont [15/16] (narrow) %v43_v24, 16 }
  0x3e   :  { %60 = vxpose.xlu0.b32.end [16/16] (narrow) %v44_v25, 16 }
  0x67   :  { %385 = vset.pattern.permute.xlu0 %v430_v6  ;;  %v280_v6 = vstv %s587_s6 }
  0x82   :  { %v61_v26 = vpop.trf.xlu0 }
  0x86   :  { %v62_v27 = vpop.trf.xlu0 }
  0x87   :  { %v77_v28 = vpack.c.bf16 %v62_v27, %v61_v26 }
  0x88   :  { %v89_v31 = vpop.permute.xlu1 %88 }
  0x89   :  { %358 = vmatprep.subr.bf16.mxu0 %v77_v28 }
  0x8a   :  { %359 = vmatpush3.bf16.msra.mxu0 %v77_v28 }
  0x8b   :  { %372 = vmatprep.subr.bf16.mxu0 %v431_v50 }
  0x8c   :  { %v94_v32 = vpop.permute.xlu1 %93 }
  0x8d   :  { %361 = vmatmul.mubr.msk.bf16.vlgmr.msra.gmra.mrb[0].mxu0 %vm116_vm0, %v387_v29 }
  0x8e   :  { %376 = vmatprep.mubr.msk.bf16.mxu0 %vm432_vm2, %v431_v50 }
  0x90   :  { %v99_v33 = vpop.permute.xlu1 %98 }
  0x94   :  { %v104_v37 = vpop.permute.xlu1 %103 }
  0x98   :  { %v189_v51 = vpop.permute.xlu1 %188 }
  0x9c   :  { %v194_v52 = vpop.permute.xlu1 %193 }
  0xa0   :  { %v199_v53 = vpop.permute.xlu1 %198 }
  0xa4   :  { %v204_v57 = vpop.permute.xlu1 %203 }
 0x160   :  { %v362_v34 = vpop.f32.mrb[0].mxu0 }
 0x161   :  { %v166_v35 = vadd.f32 %v362_v34, %v99_v33  ;;  %v157_v36 = vpop.f32.mrb[1].mxu0 }
 0x162   :  { %v158_v38 = vadd.f32 %v157_v36, %v89_v31  ;;  %v363_v39 = vpop.f32.mrb[2].mxu0 }
 0x163   :  { %390 = vtanh.f32 %v166_v35  ;;  %v169_v40 = vadd.f32 %v363_v39, %v104_v37  ;;  %v160_v41 = vpop.f32.mrb[3].mxu0 }
 0x164   :  { %392 = vtanh.f32 %v158_v38  ;;  %v161_v42 = vadd.f32 %v160_v41, %v94_v32 }
 0x165   :  { %394 = vtanh.f32 %v169_v40 }
 0x166   :  { %396 = vtanh.f32 %v161_v42 }
 0x16d   :  { %v391_v43 = vpop.eup %390 }
 0x16e   :  { %v393_v44 = vpop.eup %392 }
 0x16f   :  { %v395_v45 = vpop.eup %394 }
 0x170   :  { %v397_v46 = vpop.eup %396  ;;  %v177_v47 = vpack.c.bf16 %v395_v45, %v391_v43 }
 0x171   :  { %v176_v48 = vpack.c.bf16 %v397_v46, %v393_v44 }
 0x173   :  { %364 = vmatprep.subr.bf16.mxu1 %v176_v48 }
 0x174   :  { %365 = vmatpush3.bf16.msra.mxu1 %v176_v48 }
 0x175   :  { %366 = vmatprep.subr.bf16.mxu1 %v177_v47 }
 0x178   :  { %367 = vmatpush3.bf16.msra.mxu1 %v177_v47 }
 0x17b   :  { %369 = vmatmul.mubr.msk.bf16.vlgmr.msra.gmra.mrb[0].mxu1 %vm216_vm1, %v389_v49 }
 0x24e   :  { %v370_v54 = vpop.f32.mrb[0].mxu1 }
 0x24f   :  { %v266_v55 = vadd.f32 %v370_v54, %v199_v53  ;;  %v257_v56 = vpop.f32.mrb[1].mxu1 }
 0x250   :  { %v258_v58 = vadd.f32 %v257_v56, %v189_v51  ;;  %v371_v59 = vpop.f32.mrb[2].mxu1 }
 0x251   :  { %398 = vtanh.f32 %v266_v55  ;;  %v269_v60 = vadd.f32 %v371_v59, %v204_v57  ;;  %v260_v61 = vpop.f32.mrb[3].mxu1 }
 0x252   :  { %400 = vtanh.f32 %v258_v58  ;;  %v261_v62 = vadd.f32 %v260_v61, %v194_v52 }
 0x253   :  { %402 = vtanh.f32 %v269_v60 }
 0x254   :  { %404 = vtanh.f32 %v261_v62 }
 0x25b   :  { %v399_v63 = vpop.eup %398 }
 0x25c   :  { %v401_v0 = vpop.eup %400 }
 0x25d   :  { %v403_v1 = vpop.eup %402 }
 0x25e   :  { %v405_v2 = vpop.eup %404  ;;  %v277_v3 = vpack.c.bf16 %v403_v1, %v399_v63 }
 0x25f   :  { %v276_v4 = vpack.c.bf16 %v405_v2, %v401_v0 }
 0x261   :  { %373 = vmatpush3.bf16.msra.mxu0 %v276_v4 }
 0x262   :  { %374 = vmatprep.subr.bf16.mxu0 %v431_v50 }
 0x265   :  { %375 = vmatpush3.bf16.msra.mxu0 %v277_v3 }
 0x268   :  { %377 = vmatmul.mubr.msk.bf16.vlgmr.msra.gmra.mrb[4].mxu0 %vm216_vm1, %v278_v5 }
 0x33b   :  { %v318_v7 = vpop.f32.mrb[4].mxu0 }
 0x33c   :  { %v319_v8 = vadd.f32 %v318_v7, %v280_v6  ;;  %v378_v9 = vpop.f32.mrb[5].mxu0 }
 0x33d   :  { %v321_v10 = vpop.f32.mrb[6].mxu0 }
 0x33e   :  { %324 = vst [vmem:[#allocation3] sm:$0x1] %v319_v8  ;;  %v379_v11 = vpop.f32.mrb[7].mxu0 }
 0x33f   :  { %417 = shalt.err (!%p414_p4)
}
 0x340   :  { %s418_s6 = scalar_lea.hbm %s588_s7, 16 }
 0x341   :  { %p419_p5 = scmp.ne.s32.totalorder %s588_s7, %s418_s6  ;;  %p422_p6 = scmp.lt.u32.totalorder %s418_s6, %s588_s7 }
 0x343   :  { %p424_p7 = pnand %p422_p6, %p419_p5 }
 0x345   :  { %427 = shalt.err (!%p424_p7)
}
 0x346   :  { %334 = dma.vmem_to_hbm [thread:$0]  %s332_s10, 16, %s588_s7, [#allocation4]  }
 0x347   :  { %428 = dma.done.wait [#allocation4], 16  }
 0x348   :  { %429 = vsyncadd [#allocation4], 4294967280 }
 0x349   :  { %338 = vsyncpa [#allocation4], 1 }

</bundles_post_ra>
